<compile_context>
chip_gen: v5e
topology: v5e:2x2
jax: 0.10.0
libtpu: 0.0.40
codegen_flags: <defaults>
</compile_context>

<pallas_src>
import math

import jax
import jax.numpy as jnp
from jax.experimental import pallas as pl
from jax.experimental.pallas import tpu as pltpu

_LANE = 128
_TARGET_BLOCK_BYTES = 4 * 1024 * 1024     # ~4 MiB x-block: good on v5e/v6e/v7x
_MIN_BLOCK_BYTES = 512 * 1024             # don't shrink blocks below this for step-count


def _cdiv(a: int, b: int) -> int:
    return -(-a // b)


def _round_up(a: int, b: int) -> int:
    return _cdiv(a, b) * b


def _round_down_mult(a: int, b: int) -> int:
    return max(b, a // b * b)


def _sublane_rows(dtype) -> int:
    # VMEM tile height per dtype: 8 rows (4-byte), 16 (2-byte), 32 (1-byte).
    return {4: 8, 2: 16, 1: 32}.get(jnp.dtype(dtype).itemsize, 8)


def _vmem_limit(step_bytes: int) -> int:
    # Double-buffered pipeline footprint + headroom.  Explicit because the default
    # scoped VMEM is 16 MiB on v5e; capped at 64 MiB (v7x physical per-TC VMEM).
    return int(min(64 * 1024 * 1024, max(32 * 1024 * 1024, 2 * step_bytes + (4 << 20))))


def _prefer_divisor(cols: int, tile: int) -> int:
    """Largest multiple of 128 <= tile that divides cols, if within 2x of tile."""
    best = max(_LANE, min(cols, tile // _LANE * _LANE))
    t = best
    while t >= _LANE and 2 * t > best:
        if cols % t == 0:
            return t
        t -= _LANE
    return best


def _build_pe(d_model: int, max_len: int = 128, dtype=jnp.float32) -> jnp.ndarray:
    """Sinusoidal positional-encoding table, shape (1, max_len, d_model).

    Matches the PyTorch module (even d_model); odd d_model handled gracefully.
    Build ONCE per (d_model, max_len, dtype) and reuse — the cast is hoisted out
    of the per-call forward path.
    """
    position = jnp.arange(max_len, dtype=jnp.float32)[:, None]
    div_term = jnp.exp(
        jnp.arange(0, d_model, 2, dtype=jnp.float32) * (-(math.log(10000.0) / d_model))
    )
    angles = position * div_term
    pe = jnp.zeros((max_len, d_model), dtype=jnp.float32)
    pe = pe.at[:, 0::2].set(jnp.sin(angles))
    pe = pe.at[:, 1::2].set(jnp.cos(angles)[:, : d_model // 2])
    return pe[None, :, :].astype(dtype)


def _add_pe_kernel(x_ref, pe_ref, o_ref):
    # Shapes: (bt, tile_c)+(1, tile_c) | (tr, D)+(tr, D) | (tb, S, D)+(1, S, D).
    o_ref[...] = x_ref[...] + pe_ref[...]


def positional_encoding_forward(
    x: jnp.ndarray,
    pe: jnp.ndarray,
    *,
    target_block_bytes: int = _TARGET_BLOCK_BYTES,
    donate_x: bool = False,
) -> jnp.ndarray:
    """x: (B, S, D); pe: (1, max_len, D) already in the activation dtype."""
    B, S, D = x.shape
    _, max_len, d_model = pe.shape
    if d_model != D:
        raise ValueError(f"d_model mismatch: x has D={D}, pe has d_model={d_model}")
    if S > max_len:
        raise ValueError(f"sequence length S={S} exceeds positional table max_len={max_len}")
    if pe.dtype != x.dtype:
        # Callers should pre-cast pe (hoisted); this is a correctness fallback only.
        pe = pe.astype(x.dtype)

    itemsize = jnp.dtype(x.dtype).itemsize
    sub = _sublane_rows(x.dtype)
    aliases = {0: 0} if donate_x else {}
    cols = S * D

    # ------------------------------------------------------------------ Path B
    if cols % _LANE != 0:
        # Trailing block dims = full (S, D) so any shape is legal; batch TB
        # sequences per block to amortize the per-step overhead.
        # (Odd-D output stores are lane-masked; pad D to 128 upstream if this
        #  path is ever hot in production.)
        pe_slice = pe[:, :S, :]
        padded_slice = _round_up(S, sub) * _round_up(D, _LANE) * itemsize
        tb = max(1, min(B, target_block_bytes // max(1, padded_slice)))
        n_bb = _cdiv(B, tb)
        step_bytes = (2 * tb + 1) * padded_slice
        return pl.pallas_call(
            _add_pe_kernel,
            out_shape=jax.ShapeDtypeStruct((B, S, D), x.dtype),
            grid_spec=pltpu.PrefetchScalarGridSpec(
                num_scalar_prefetch=0,
                grid=(n_bb,),
                in_specs=[
                    pl.BlockSpec((tb, S, D), lambda b: (b, 0, 0)),
                    pl.BlockSpec((1, S, D), lambda b: (0, 0, 0)),
                ],
                out_specs=pl.BlockSpec((tb, S, D), lambda b: (b, 0, 0)),
            ),
            compiler_params=pltpu.CompilerParams(
                dimension_semantics=("parallel",),
                vmem_limit_bytes=_vmem_limit(step_bytes),
            ),
            input_output_aliases=aliases,
        )(x, pe_slice)

    # ----------------------------------------------------------------- Path A2
    if B < sub and D % _LANE == 0 and S % sub == 0:
        # Small batch: (B*S, D) row tiles -> dense sublanes and lanes.
        R = B * S
        x2 = x.reshape(R, D)
        pe2 = pe.reshape(max_len, D)

        budget_rows = _round_down_mult(target_block_bytes // (D * itemsize), sub)
        min_steps = 8 if R >= 8 * sub else (2 if R >= 2 * sub else 1)
        start = min(S, budget_rows, _round_down_mult(max(sub, R // min_steps), sub))
        tr = sub
        for t in range(start, sub - 1, -sub):
            if S % t == 0:
                tr = t
                break
        n_r = R // tr
        n_pe = S // tr
        if n_pe == 1:
            pe_map = lambda r: (0, 0)        # pe block resident: fetched once total
        else:
            pe_map = lambda r: (r % n_pe, 0)

        step_bytes = 3 * tr * D * itemsize
        out2 = pl.pallas_call(
            _add_pe_kernel,
            out_shape=jax.ShapeDtypeStruct((R, D), x.dtype),
            grid_spec=pltpu.PrefetchScalarGridSpec(
                num_scalar_prefetch=0,
                grid=(n_r,),
                in_specs=[
                    pl.BlockSpec((tr, D), lambda r: (r, 0)),
                    pl.BlockSpec((tr, D), pe_map),
                ],
                out_specs=pl.BlockSpec((tr, D), lambda r: (r, 0)),
            ),
            compiler_params=pltpu.CompilerParams(
                dimension_semantics=("parallel",),
                vmem_limit_bytes=_vmem_limit(step_bytes),
            ),
            input_output_aliases=aliases,
        )(x2, pe2)
        return out2.reshape(B, S, D)

    # ------------------------------------------------------------------ Path A
    # Lane-dense (B, S*D) layout; pe broadcast over batch in-register.
    x2 = x.reshape(B, cols)
    pe2 = pe.reshape(1, max_len * D)       # [:S] slice expressed via grid extent

    bt = B if B <= 8 * sub else 8 * sub    # batch rows per block (large B is tiled)
    n_b = _cdiv(B, bt)
    padded_bt = _round_up(bt, sub)         # real VMEM sublane footprint (review fix)

    max_tile = _round_down_mult(target_block_bytes // (padded_bt * itemsize), _LANE)
    tile_c = min(cols, max_tile)
    if n_b == 1:
        # Prefer ~8 column steps (v7x dual-core sharding + pipelining) while
        # keeping each block >= ~512 KiB so per-step overhead stays small.
        min_tile = _round_down_mult(_MIN_BLOCK_BYTES // (padded_bt * itemsize), _LANE)
        tile_c = min(tile_c, max(min_tile, _round_up(_cdiv(cols, 8), _LANE)))
    tile_c = min(tile_c, cols)
    tile_c = _prefer_divisor(cols, tile_c)  # avoid masked trailing tile / pe overrun
    n_c = _cdiv(cols, tile_c)

    step_bytes = (2 * padded_bt + sub) * tile_c * itemsize   # x + out + pe (padded)
    out2 = pl.pallas_call(
        _add_pe_kernel,
        out_shape=jax.ShapeDtypeStruct((B, cols), x.dtype),
        grid_spec=pltpu.PrefetchScalarGridSpec(
            num_scalar_prefetch=0,
            # batch is the fastest axis -> pe block index changes only with the
            # column step, so pe is read from HBM once per column tile.
            grid=(n_c, n_b),
            in_specs=[
                pl.BlockSpec((bt, tile_c), lambda c, b: (b, c)),
                pl.BlockSpec((1, tile_c), lambda c, b: (0, c)),
            ],
            out_specs=pl.BlockSpec((bt, tile_c), lambda c, b: (b, c)),
        ),
        compiler_params=pltpu.CompilerParams(
            dimension_semantics=("parallel", "parallel"),
            vmem_limit_bytes=_vmem_limit(step_bytes),
        ),
        input_output_aliases=aliases,
    )(x2, pe2)
    return out2.reshape(B, S, D)


if __name__ == "__main__":
    MAX_LEN = 128
    key = jax.random.PRNGKey(0)

    # 1) Primary check (Path A, lane-dense flatten): B=2, S=8, D=32.
    B, S, D = 2, 8, 32
    x = jax.random.normal(key, (B, S, D), dtype=jnp.float32)
    pe_f32 = _build_pe(D, MAX_LEN, dtype=jnp.float32)          # built once, reused
    out = jax.block_until_ready(positional_encoding_forward(x, pe_f32))
    ref = x + pe_f32[:, :S, :]
    assert out.shape == (B, S, D)
    assert jnp.allclose(out, ref, atol=1e-6), "f32 (Path A) mismatch vs reference"

    # 2) bf16 activations: pe pre-built in bf16 (cast hoisted out of the forward).
    xb = x.astype(jnp.bfloat16)
    pe_bf16 = _build_pe(D, MAX_LEN, dtype=jnp.bfloat16)
    outb = jax.block_until_ready(positional_encoding_forward(xb, pe_bf16))
    refb = xb + pe_bf16[:, :S, :]
    assert jnp.allclose(outb.astype(jnp.float32), refb.astype(jnp.float32),
                        atol=1e-2, rtol=1e-2), "bf16 mismatch vs reference"

    # 3) Small-batch row-tile layout (Path A2): D=128 (lane-aligned), S=8, B=2.
    D3 = 128
    x3 = jax.random.normal(jax.random.PRNGKey(2), (B, S, D3), dtype=jnp.float32)
    pe3 = _build_pe(D3, MAX_LEN, dtype=jnp.float32)
    out3 = jax.block_until_ready(positional_encoding_forward(x3, pe3))
    ref3 = x3 + pe3[:, :S, :]
    assert jnp.allclose(out3, ref3, atol=1e-6), "Path A2 mismatch vs reference"

    # 4) Fallback path (Path B): D=20 -> S*D = 160, not a multiple of 128.
    D2 = 20
    x_odd = jax.random.normal(jax.random.PRNGKey(1), (B, S, D2), dtype=jnp.float32)
    pe_odd = _build_pe(D2, MAX_LEN, dtype=jnp.float32)
    out_odd = jax.block_until_ready(positional_encoding_forward(x_odd, pe_odd))
    ref_odd = x_odd + pe_odd[:, :S, :]
    assert jnp.allclose(out_odd, ref_odd, atol=1e-6), "fallback (Path B) mismatch"

    print("KERNEL_OK")
</pallas_src>

<mosaic_0001>
module attributes {stable_mosaic.version = 11 : i64} {
  func.func @_add_pe_kernel(%arg0: i32, %arg1: i32, %arg2: memref<2x256xf32, #tpu.memory_space<vmem>>, %arg3: memref<1x256xf32, #tpu.memory_space<vmem>>, %arg4: memref<2x256xf32, #tpu.memory_space<vmem>>) attributes {dimension_semantics = [#tpu.dimension_semantics<parallel>, #tpu.dimension_semantics<parallel>], iteration_bounds = array<i64: 1, 1>, scalar_prefetch = 0 : i64, scratch_operands = 0 : i64, tpu.core_type = #tpu.core_type<tc>, window_params = [{transform_indices = @transform_0, window_bounds = array<i64: 2, 256>}, {transform_indices = @transform_1, window_bounds = array<i64: 1, 256>}, {transform_indices = @transform_2, window_bounds = array<i64: 2, 256>}]} {
    %c0 = arith.constant 0 : index
    %c0_0 = arith.constant 0 : index
    %0 = vector.load %arg2[%c0, %c0_0] : memref<2x256xf32, #tpu.memory_space<vmem>>, vector<2x256xf32>
    %c0_1 = arith.constant 0 : index
    %c0_2 = arith.constant 0 : index
    %1 = vector.load %arg3[%c0_1, %c0_2] : memref<1x256xf32, #tpu.memory_space<vmem>>, vector<1x256xf32>
    %2 = vector.broadcast %1 : vector<1x256xf32> to vector<2x256xf32>
    %3 = arith.addf %0, %2 : vector<2x256xf32>
    %c0_3 = arith.constant 0 : index
    %c0_4 = arith.constant 0 : index
    %4 = vector.load %arg4[%c0_3, %c0_4] : memref<2x256xf32, #tpu.memory_space<vmem>>, vector<2x256xf32>
    tpu.vector_store %arg4[%c0_3, %c0_4], %3 {strides = array<i32>} : memref<2x256xf32, #tpu.memory_space<vmem>>, vector<2x256xf32>,
    return
  }
  func.func @transform_0(%arg0: i32, %arg1: i32) -> (i32, i32) {
    %c0_i32 = arith.constant 0 : i32
    return %arg1, %arg0 : i32, i32
  }
  func.func @transform_1(%arg0: i32, %arg1: i32) -> (i32, i32) {
    %c0_i32 = arith.constant 0 : i32
    %c0_i32_0 = arith.constant 0 : i32
    return %c0_i32, %arg0 : i32, i32
  }
  func.func @transform_2(%arg0: i32, %arg1: i32) -> (i32, i32) {
    %c0_i32 = arith.constant 0 : i32
    return %arg1, %arg0 : i32, i32
  }
}

</mosaic_0001>

<bundles_post_ra>
// kernel: tpu_custom_call.1
= control target key start
LH: loop header
LB: loop body
LE: loop exit
PB: predicated region body
PF: predicated region fallthrough
CT: control target
= control target key end

     0   :  { %7 = vsyncpa [#allocation3], 0  ;;  %s177_s0 = inlined_call_operand.hbm [shape: f32[2,256], index: 0, kind: input, shape index: {}]   ;;  %s178_s1 = inlined_call_operand.hbm [shape: f32[1,4096], index: 1, kind: input, shape index: {}]   ;;  %s179_s2 = inlined_call_operand.hbm [shape: f32[2,256], index: 2, kind: output, shape index: {}]  }
   0x1   :  { %8 = vsyncpa [#allocation6], 0 }
   0x2   :  { %9 = vsyncpa [#allocation4], 0  ;;  %s15_s11 = sshll.u32 %s177_s0, 4  ;;  %s150_s12 = smov [#allocation2]   ;;  %s16_s11 = int_to_ptr.hbm [resolvable:$true] %s15_s11 }
   0x3   :  { %s17_s13 = sshll.u32 %s150_s12, 4  ;;  %s26_s16 = sshll.u32 %s178_s1, 4  ;;  %s18_s13 = int_to_ptr.vmem [resolvable:$true] %s17_s13  ;;  %s27_s16 = int_to_ptr.hbm [resolvable:$true] %s26_s16 }
   0x4   :  { %20 = dma.hbm_to_vmem [thread:$0]  %s16_s11, 64, %s18_s13, [#allocation3]  }
   0x5   :  { %s151_s17 = smov [#allocation5]  }
   0x6   :  { %s28_s18 = sshll.u32 %s151_s17, 4  ;;  %s29_s18 = int_to_ptr.vmem [resolvable:$true] %s28_s18 }
   0x7   :  { %31 = dma.hbm_to_vmem [thread:$0]  %s27_s16, 32, %s29_s18, [#allocation6]  }
   0x8   :  { %144 = dma.done.wait [#allocation3], 64  }
   0x9   :  { %145 = vsyncadd [#allocation3], 4294967232 }
   0xa   :  { %146 = dma.done.wait [#allocation6], 32  }
   0xb   :  { %147 = vsyncadd [#allocation6], 4294967264  ;;  %v41_v0 = vld [vmem:[#allocation5] sm:$0x3]  ;;  %vm46_vm0 = vcmask 1041408   ;;  %s152_s0 = smov [#allocation7]  }
   0xc   :  { %v43_v1 = vperm.slane %v41_v0, 0  ;;  %v44_v2 = vperm.slane %v41_v0, 1  ;;  %v40_v3 = vld [vmem:[#allocation2] sm:$0xf]  ;;  %s56_s19 = sshll.u32 %s152_s0, 4  ;;  %s58_s21 = sshll.u32 %s179_s2, 4  ;;  %s57_s19 = int_to_ptr.vmem [resolvable:$true] %s56_s19  ;;  %s59_s21 = int_to_ptr.hbm [resolvable:$true] %s58_s21 }
   0xe   :  { %v45_v4 = vrot.slane %v44_v2, 6 }
  0x10   :  { %v47_v5 = vsel %vm46_vm0, %v43_v1, %v45_v4 }
  0x11   :  { %v49_v6 = vadd.f32 %v47_v5, %v40_v3 }
  0x13   :  { %50 = vst [vmem:[#allocation7] sm:$0xf] %v49_v6 }
  0x14   :  { %61 = dma.vmem_to_hbm [thread:$0]  %s57_s19, 64, %s59_s21, [#allocation4]  }
  0x15   :  { %148 = dma.done.wait [#allocation4], 64  }
  0x16   :  { %149 = vsyncadd [#allocation4], 4294967232 }
  0x17   :  { %66 = vsyncpa [#allocation3], 1 }
  0x18   :  { %67 = vsyncpa [#allocation6], 1 }
  0x19   :  { %68 = vsyncpa [#allocation4], 1 }

</bundles_post_ra>
